<compile_context>
chip_gen: v6e
topology: v6e:2x2x1
jax: 0.10.0
libtpu: 0.0.40
codegen_flags: <defaults>
</compile_context>

<pallas_src>
import functools

import jax
import jax.numpy as jnp
from jax import lax
from jax.experimental import pallas as pl
from jax.experimental.pallas import tpu as pltpu


def _focal_elementwise(p_or_x, t, alpha, gamma, logits):
    """Per-element focal loss (traced inside the kernel), computed in f32."""
    x = p_or_x.astype(jnp.float32)
    t = t.astype(jnp.float32)
    if logits:
        # Numerically stable BCE-with-logits: max(x,0) - x*t + log1p(exp(-|x|))
        bce = jnp.maximum(x, 0.0) - x * t + jnp.log1p(jnp.exp(-jnp.abs(x)))
    else:
        # PyTorch's binary_cross_entropy clamps log terms at -100.
        log_p = jnp.maximum(jnp.log(x), -100.0)
        log_1mp = jnp.maximum(jnp.log(1.0 - x), -100.0)
        bce = -(t * log_p + (1.0 - t) * log_1mp)
    pt = jnp.exp(-bce)
    q = 1.0 - pt

    g_int = int(gamma)
    if float(g_int) == float(gamma) and g_int >= 0:
        # Integral gamma: chain of VALU multiplies, no EUP exp/log pair.
        if g_int == 0:
            mod = jnp.ones_like(q)
        else:
            mod = q
            for _ in range(g_int - 1):
                mod = mod * q
    else:
        mod = q ** gamma  # float-pow fallback for non-integral gamma

    return alpha * mod * bce


def _focal_reduce_kernel(x_ref, t_ref, o_ref, acc_ref, *, alpha, gamma, logits,
                         n_valid, tile, lanes, steps, inv_n, need_mask):
    """Vector-accumulates FL over row-blocks of one slice; epilogue reduces."""
    c = pl.program_id(0)   # slice (parallel across cores on v7x)
    i = pl.program_id(1)   # reduction step within the slice

    @pl.when(i == 0)
    def _():
        acc_ref[...] = jnp.zeros_like(acc_ref)

    fl = _focal_elementwise(x_ref[...], t_ref[...], alpha, gamma, logits)

    if need_mask:
        block = c * steps + i
        row0 = block * tile
        rows = lax.broadcasted_iota(jnp.int32, (tile, lanes), 0) + row0
        cols = lax.broadcasted_iota(jnp.int32, (tile, lanes), 1)
        flat = rows * lanes + cols
        fl = jnp.where(flat < n_valid, fl, 0.0)

    acc_ref[...] += fl           # pure VPU in the steady-state loop

    @pl.when(i == steps - 1)
    def _():
        # Single XLU reduction per slice + scale by 1/N.
        o_ref[...] = (jnp.sum(acc_ref[...]) * inv_n).reshape(1, 1)


def _focal_map_kernel(x_ref, t_ref, o_ref, *, alpha, gamma, logits):
    """Elementwise focal loss (reduce=False path)."""
    o_ref[...] = _focal_elementwise(
        x_ref[...], t_ref[...], alpha, gamma, logits).astype(o_ref.dtype)


def _round_up(x, m):
    return (x + m - 1) // m * m


def focal_loss(inputs, targets, *, alpha=1.0, gamma=2.0, logits=False,
               reduce=True, max_tile_rows=1024):
    """Pallas implementation of FocalLoss.forward.

    inputs/targets: arrays of identical shape (e.g. NCHW), any float dtype.
    Returns a scalar (reduce=True) or an f32 array of the same shape.
    """
    orig_shape = inputs.shape
    n = int(inputs.size)
    lanes = 128

    rows_raw = pl.cdiv(n, lanes)
    tile = min(max_tile_rows, _round_up(rows_raw, 8))   # multiple of 8 sublanes
    total_blocks = pl.cdiv(rows_raw, tile)

    # Split the reduction across two "parallel" slices so both TensorCores of
    # a v7x megacore participate; harmless (serial) on v5e/v6e.
    num_slices = 2 if (reduce and total_blocks >= 2) else 1
    steps = pl.cdiv(total_blocks, num_slices)
    rows_padded = num_slices * steps * tile
    n_padded = rows_padded * lanes
    need_mask = (n_padded != n)

    # Flatten + pad to a whole number of (tile, 128) blocks.  No dtype cast
    # here: upcast to f32 happens inside the kernel, so bf16 callers only
    # move bf16 bytes over HBM.
    x_flat = inputs.reshape(-1)
    t_flat = targets.reshape(-1)
    if need_mask:
        pad = n_padded - n
        x_flat = jnp.pad(x_flat, (0, pad), constant_values=0.5)
        t_flat = jnp.pad(t_flat, (0, pad), constant_values=0.0)
    x2 = x_flat.reshape(rows_padded, lanes)
    t2 = t_flat.reshape(rows_padded, lanes)

    if reduce:
        kernel = functools.partial(
            _focal_reduce_kernel, alpha=float(alpha), gamma=gamma,
            logits=bool(logits), n_valid=n, tile=tile, lanes=lanes,
            steps=steps, inv_n=1.0 / float(n), need_mask=need_mask)
        partials = pl.pallas_call(
            kernel,
            out_shape=jax.ShapeDtypeStruct((num_slices, 1), jnp.float32),
            grid_spec=pltpu.PrefetchScalarGridSpec(
                num_scalar_prefetch=0,
                grid=(num_slices, steps),
                in_specs=[
                    pl.BlockSpec((tile, lanes), lambda c, i: (c * steps + i, 0)),
                    pl.BlockSpec((tile, lanes), lambda c, i: (c * steps + i, 0)),
                ],
                out_specs=pl.BlockSpec((1, 1), lambda c, i: (c, 0)),
                scratch_shapes=[pltpu.VMEM((tile, lanes), jnp.float32)],
            ),
            compiler_params=pltpu.CompilerParams(
                dimension_semantics=("parallel", "arbitrary")),
        )(x2, t2)
        # Each partial already carries the 1/N factor; sum of partials = mean.
        return jnp.sum(partials)
    else:
        kernel = functools.partial(
            _focal_map_kernel, alpha=float(alpha), gamma=gamma,
            logits=bool(logits))
        out = pl.pallas_call(
            kernel,
            out_shape=jax.ShapeDtypeStruct((rows_padded, lanes), jnp.float32),
            grid_spec=pltpu.PrefetchScalarGridSpec(
                num_scalar_prefetch=0,
                grid=(total_blocks,),
                in_specs=[
                    pl.BlockSpec((tile, lanes), lambda i: (i, 0)),
                    pl.BlockSpec((tile, lanes), lambda i: (i, 0)),
                ],
                out_specs=pl.BlockSpec((tile, lanes), lambda i: (i, 0)),
            ),
            compiler_params=pltpu.CompilerParams(
                dimension_semantics=("parallel",)),
        )(x2, t2)
        return out.reshape(-1)[:n].reshape(orig_shape)


def _ref_focal_loss(inputs, targets, alpha=1.0, gamma=2.0, logits=False,
                    reduce=True):
    """Pure-JAX reference for correctness checking."""
    x = inputs.astype(jnp.float32)
    t = targets.astype(jnp.float32)
    if logits:
        bce = jnp.maximum(x, 0.0) - x * t + jnp.log1p(jnp.exp(-jnp.abs(x)))
    else:
        bce = -(t * jnp.maximum(jnp.log(x), -100.0)
                + (1.0 - t) * jnp.maximum(jnp.log(1.0 - x), -100.0))
    pt = jnp.exp(-bce)
    fl = alpha * (1.0 - pt) ** gamma * bce
    return jnp.mean(fl) if reduce else fl


if __name__ == "__main__":
    key = jax.random.PRNGKey(0)
    k1, k2, k3, k4 = jax.random.split(key, 4)

    # Small NCHW-shaped "prediction" probabilities and binary targets.
    B, C, H, W = 2, 4, 16, 16
    probs = jax.random.uniform(k1, (B, C, H, W), jnp.float32,
                               minval=0.01, maxval=0.99)
    targets = (jax.random.uniform(k2, (B, C, H, W)) > 0.5).astype(jnp.float32)

    # Default module config: alpha=1, gamma=2, logits=False, reduce=True.
    out = jax.block_until_ready(
        focal_loss(probs, targets, alpha=1.0, gamma=2.0,
                   logits=False, reduce=True))
    ref = _ref_focal_loss(probs, targets)
    assert jnp.allclose(out, ref, rtol=1e-5, atol=1e-6), (out, ref)

    # reduce=False (elementwise) path.
    out_map = jax.block_until_ready(focal_loss(probs, targets, reduce=False))
    ref_map = _ref_focal_loss(probs, targets, reduce=False)
    assert out_map.shape == (B, C, H, W)
    assert jnp.allclose(out_map, ref_map, rtol=1e-5, atol=1e-6)

    # Ragged shape (exercises the padding + in-kernel mask) with logits=True.
    shape2 = (2, 3, 7, 11)
    logits_in = jax.random.normal(k3, shape2, jnp.float32)
    targets2 = (jax.random.uniform(k4, shape2) > 0.5).astype(jnp.float32)
    out2 = jax.block_until_ready(
        focal_loss(logits_in, targets2, logits=True, reduce=True))
    ref2 = _ref_focal_loss(logits_in, targets2, logits=True, reduce=True)
    assert jnp.allclose(out2, ref2, rtol=1e-5, atol=1e-6), (out2, ref2)

    print("KERNEL_OK")
</pallas_src>

<mosaic_0001>
module attributes {stable_mosaic.version = 11 : i64} {
  func.func @_focal_reduce_kernel(%arg0: i32, %arg1: i32, %arg2: memref<16x128xf32, #tpu.memory_space<vmem>>, %arg3: memref<16x128xf32, #tpu.memory_space<vmem>>, %arg4: memref<1x1xf32, #tpu.memory_space<vmem>>, %arg5: memref<16x128xf32, #tpu.memory_space<vmem>>) attributes {dimension_semantics = [#tpu.dimension_semantics<parallel>, #tpu.dimension_semantics<arbitrary>], iteration_bounds = array<i64: 1, 1>, scalar_prefetch = 0 : i64, scratch_operands = 1 : i64, tpu.core_type = #tpu.core_type<tc>, window_params = [{transform_indices = @transform_0, window_bounds = array<i64: 16, 128>}, {transform_indices = @transform_1, window_bounds = array<i64: 16, 128>}, {transform_indices = @transform_2, window_bounds = array<i64: 1, 1>}]} {
    %c0_i32 = arith.constant 0 : i32
    %0 = arith.cmpi eq, %arg1, %c0_i32 : i32
    %1 = arith.extui %0 : i1 to i32
    %c0_i32_0 = arith.constant 0 : i32
    %2 = arith.cmpi ne, %1, %c0_i32_0 : i32
    scf.if %2 {
      %cst_17 = arith.constant 0.000000e+00 : f32
      %35 = vector.broadcast %cst_17 : f32 to vector<16x128xf32>
      %c0_18 = arith.constant 0 : index
      %c0_19 = arith.constant 0 : index
      %36 = vector.load %arg5[%c0_18, %c0_19] : memref<16x128xf32, #tpu.memory_space<vmem>>, vector<16x128xf32>
      tpu.vector_store %arg5[%c0_18, %c0_19], %35 {strides = array<i32>} : memref<16x128xf32, #tpu.memory_space<vmem>>, vector<16x128xf32>,
    } else {
    }
    %c0 = arith.constant 0 : index
    %c0_1 = arith.constant 0 : index
    %3 = vector.load %arg2[%c0, %c0_1] : memref<16x128xf32, #tpu.memory_space<vmem>>, vector<16x128xf32>
    %c0_2 = arith.constant 0 : index
    %c0_3 = arith.constant 0 : index
    %4 = vector.load %arg3[%c0_2, %c0_3] : memref<16x128xf32, #tpu.memory_space<vmem>>, vector<16x128xf32>
    %5 = math.log %3 : vector<16x128xf32>
    %cst = arith.constant -1.000000e+02 : f32
    %6 = vector.broadcast %cst : f32 to vector<16x128xf32>
    %7 = arith.maximumf %5, %6 : vector<16x128xf32>
    %cst_4 = arith.constant 1.000000e+00 : f32
    %8 = vector.broadcast %cst_4 : f32 to vector<16x128xf32>
    %9 = arith.subf %8, %3 : vector<16x128xf32>
    %10 = math.log %9 : vector<16x128xf32>
    %cst_5 = arith.constant -1.000000e+02 : f32
    %11 = vector.broadcast %cst_5 : f32 to vector<16x128xf32>
    %12 = arith.maximumf %10, %11 : vector<16x128xf32>
    %13 = arith.mulf %4, %7 : vector<16x128xf32>
    %cst_6 = arith.constant 1.000000e+00 : f32
    %14 = vector.broadcast %cst_6 : f32 to vector<16x128xf32>
    %15 = arith.subf %14, %4 : vector<16x128xf32>
    %16 = arith.mulf %15, %12 : vector<16x128xf32>
    %17 = arith.addf %13, %16 : vector<16x128xf32>
    %cst_7 = arith.constant 0.000000e+00 : f32
    %18 = vector.broadcast %cst_7 : f32 to vector<16x128xf32>
    %19 = arith.subf %18, %17 : vector<16x128xf32>
    %cst_8 = arith.constant 0.000000e+00 : f32
    %20 = vector.broadcast %cst_8 : f32 to vector<16x128xf32>
    %21 = arith.subf %20, %19 : vector<16x128xf32>
    %22 = math.exp %21 : vector<16x128xf32>
    %cst_9 = arith.constant 1.000000e+00 : f32
    %23 = vector.broadcast %cst_9 : f32 to vector<16x128xf32>
    %24 = arith.subf %23, %22 : vector<16x128xf32>
    %25 = arith.mulf %24, %24 : vector<16x128xf32>
    %cst_10 = arith.constant 1.000000e+00 : f32
    %26 = vector.broadcast %cst_10 : f32 to vector<16x128xf32>
    %27 = arith.mulf %26, %25 : vector<16x128xf32>
    %28 = arith.mulf %27, %19 : vector<16x128xf32>
    %c0_11 = arith.constant 0 : index
    %c0_12 = arith.constant 0 : index
    %29 = vector.load %arg5[%c0_11, %c0_12] : memref<16x128xf32, #tpu.memory_space<vmem>>, vector<16x128xf32>
    %30 = arith.addf %29, %28 : vector<16x128xf32>
    %c0_13 = arith.constant 0 : index
    %c0_14 = arith.constant 0 : index
    %31 = vector.load %arg5[%c0_13, %c0_14] : memref<16x128xf32, #tpu.memory_space<vmem>>, vector<16x128xf32>
    tpu.vector_store %arg5[%c0_13, %c0_14], %30 {strides = array<i32>} : memref<16x128xf32, #tpu.memory_space<vmem>>, vector<16x128xf32>,
    %c0_i32_15 = arith.constant 0 : i32
    %32 = arith.cmpi eq, %arg1, %c0_i32_15 : i32
    %33 = arith.extui %32 : i1 to i32
    %c0_i32_16 = arith.constant 0 : i32
    %34 = arith.cmpi ne, %33, %c0_i32_16 : i32
    scf.if %34 {
      %c0_17 = arith.constant 0 : index
      %c0_18 = arith.constant 0 : index
      %35 = vector.load %arg5[%c0_17, %c0_18] : memref<16x128xf32, #tpu.memory_space<vmem>>, vector<16x128xf32>
      %36 = vector.shape_cast %35 : vector<16x128xf32> to vector<1x16x128xf32>
      %cst_19 = arith.constant dense<0.000000e+00> : vector<1xf32>
      %37 = vector.multi_reduction <add>, %36, %cst_19 [1, 2] : vector<1x16x128xf32> to vector<1xf32>
      %38 = vector.shape_cast %37 : vector<1xf32> to vector<1x1x1xf32>
      %39 = vector.extract %38[0, 0, 0] : f32 from vector<1x1x1xf32>
      %cst_20 = arith.constant 4.8828125E-4 : f32
      %40 = arith.mulf %39, %cst_20 : f32
      %41 = vector.broadcast %40 : f32 to vector<1x1xf32>
      %c0_21 = arith.constant 0 : index
      %c0_22 = arith.constant 0 : index
      %42 = vector.load %arg4[%c0_21, %c0_22] : memref<1x1xf32, #tpu.memory_space<vmem>>, vector<1x1xf32>
      tpu.vector_store %arg4[%c0_21, %c0_22], %41 {strides = array<i32>} : memref<1x1xf32, #tpu.memory_space<vmem>>, vector<1x1xf32>,
    } else {
    }
    return
  }
  func.func @transform_0(%arg0: i32, %arg1: i32) -> (i32, i32) {
    %c1_i32 = arith.constant 1 : i32
    %0 = arith.muli %arg0, %c1_i32 : i32
    %1 = arith.addi %0, %arg1 : i32
    %c0_i32 = arith.constant 0 : i32
    %c0_i32_0 = arith.constant 0 : i32
    return %1, %c0_i32 : i32, i32
  }
  func.func @transform_1(%arg0: i32, %arg1: i32) -> (i32, i32) {
    %c1_i32 = arith.constant 1 : i32
    %0 = arith.muli %arg0, %c1_i32 : i32
    %1 = arith.addi %0, %arg1 : i32
    %c0_i32 = arith.constant 0 : i32
    %c0_i32_0 = arith.constant 0 : i32
    return %1, %c0_i32 : i32, i32
  }
  func.func @transform_2(%arg0: i32, %arg1: i32) -> (i32, i32) {
    %c0_i32 = arith.constant 0 : i32
    %c0_i32_0 = arith.constant 0 : i32
    return %arg0, %c0_i32 : i32, i32
  }
}

</mosaic_0001>

<bundles_post_ra>
// kernel: tpu_custom_call.1
= control target key start
LH: loop header
LB: loop body
LE: loop exit
PB: predicated region body
PF: predicated region fallthrough
CT: control target
= control target key end

     0   :  { %7 = vsyncpa [#allocation4], 0  ;;  %s253_s0 = inlined_call_operand.hbm [shape: f32[16,128], index: 0, kind: input, shape index: {}]   ;;  %s254_s1 = inlined_call_operand.hbm [shape: f32[16,128], index: 1, kind: input, shape index: {}]   ;;  %s255_s2 = inlined_call_operand.hbm [shape: f32[1,1], index: 2, kind: output, shape index: {}]  }
   0x1   :  { %8 = vsyncpa [#allocation7], 0 }
   0x2   :  { %9 = vsyncpa [#allocation5], 0  ;;  %s224_s9 = smov [#allocation3]  }
   0x3   :  { %s19_s10 = sshll.u32 %s224_s9, 4  ;;  %s20_s10 = int_to_ptr.vmem [resolvable:$true] %s19_s10 }
   0x4   :  { %s166_s11 = scalar_lea.vmem %s20_s10, 256  ;;  %p171_p1 = scmp.lt.s32.totalorder %s20_s10, %s20_s10 }
   0x5   :  { %p167_p0 = scmp.ne.s32.totalorder %s20_s10, %s166_s11  ;;  %p172_p2 = scmp.lt.s32.totalorder %s166_s11, %s166_s11 }
   0x7   :  { %p173_p3 = por %p172_p2, %p171_p1 }
   0x9   :  { %p174_p4 = pnand %p173_p3, %p167_p0 }
   0xb   :  { %177 = shalt.err (!%p174_p4)
}
   0xc   :  { %s225_s12 = smov 128   ;;  %s226_s13 = smov 8  }
   0xd   :  { %25 = dma.hbm_to_vmem [thread:$0]  %s253_s0, 256, %s20_s10, [#allocation4], %s225_s12, %s225_s12, %s226_s13  }
   0xe   :  { %s227_s16 = smov [#allocation6]  }
   0xf   :  { %s35_s17 = sshll.u32 %s227_s16, 4  ;;  %s36_s17 = int_to_ptr.vmem [resolvable:$true] %s35_s17 }
  0x10   :  { %s186_s18 = scalar_lea.vmem %s36_s17, 256  ;;  %p191_p6 = scmp.lt.s32.totalorder %s36_s17, %s36_s17 }
  0x11   :  { %p187_p5 = scmp.ne.s32.totalorder %s36_s17, %s186_s18  ;;  %p192_p7 = scmp.lt.s32.totalorder %s186_s18, %s186_s18 }
  0x13   :  { %p193_p8 = por %p192_p7, %p191_p6 }
  0x15   :  { %p194_p9 = pnand %p193_p8, %p187_p5 }
  0x17   :  { %197 = shalt.err (!%p194_p9)
}
  0x18   :  { %41 = dma.hbm_to_vmem [thread:$0]  %s254_s1, 256, %s36_s17, [#allocation7], %s225_s12, %s225_s12, %s226_s13  }
  0x19   :  { %218 = dma.done.wait [#allocation4], 256  }
  0x1a   :  { %219 = vsyncadd [#allocation4], 4294967040 }
  0x1b   :  { %220 = dma.done.wait [#allocation7], 256  }
  0x1c   :  { %221 = vsyncadd [#allocation7], 4294967040  ;;  %v58_v0 = vld [vmem:[#allocation3] sm:$0xff]  ;;  %v59_v1 = vld [vmem:[#allocation3 + $0x8] sm:$0xff]  ;;  %s228_s0 = smov [#allocation8]   ;;  %vm121_vm0 = vcmask 0  }
  0x1d   :  { %146 = vlog2.f32 %v58_v0  ;;  %v68_v2 = vsub.f32 1.0, %v58_v0  ;;  %v69_v3 = vsub.f32 1.0, %v59_v1  ;;  %v60_v5 = vld [vmem:[#allocation6] sm:$0xff]  ;;  %v61_v7 = vld [vmem:[#allocation6 + $0x8] sm:$0xff]  ;;  %s129_s1 = sshll.u32 %s228_s0, 4  ;;  %s130_s1 = int_to_ptr.vmem [resolvable:$true] %s129_s1 }
  0x1e   :  { %148 = vlog2.f32 %v59_v1  ;;  %v78_v14 = vsub.f32 1.0, %v60_v5  ;;  %v79_v17 = vsub.f32 1.0, %v61_v7  ;;  %s198_s23 = scalar_lea.vmem %s130_s1, 16  ;;  %s202_s24 = scalar_lea.vmem %s130_s1, 32 }
  0x1f   :  { %150 = vlog2.f32 %v68_v2  ;;  %p199_p10 = scmp.ne.s32.totalorder %s130_s1, %s198_s23  ;;  %p203_p11 = scmp.lt.s32.totalorder %s130_s1, %s130_s1 }
  0x20   :  { %152 = vlog2.f32 %v69_v3  ;;  %p204_p12 = scmp.lt.s32.totalorder %s202_s24, %s198_s23 }
  0x22   :  { %p205_p13 = por %p204_p12, %p203_p11 }
  0x24   :  { %p206_p0 = pnand %p205_p13, %p199_p10 }
  0x2a   :  { %v147_v4 = vpop.eup %146 }
  0x2b   :  { %v149_v6 = vpop.eup %148  ;;  %v63_v8 = vmul.f32 0.6931472, %v147_v4 }
  0x2c   :  { %v151_v9 = vpop.eup %150  ;;  %v65_v10 = vmul.f32 0.6931472, %v149_v6 }
  0x2d   :  { %v153_v11 = vpop.eup %152  ;;  %v66_v12 = vmax.f32 %v63_v8, -100.0  ;;  %v71_v13 = vmul.f32 0.6931472, %v151_v9 }
  0x2e   :  { %v67_v15 = vmax.f32 %v65_v10, -100.0  ;;  %v73_v16 = vmul.f32 0.6931472, %v153_v11 }
  0x2f   :  { %v74_v18 = vmax.f32 %v71_v13, -100.0  ;;  %v76_v19 = vmul.f32 %v66_v12, %v60_v5 }
  0x30   :  { %v75_v20 = vmax.f32 %v73_v16, -100.0  ;;  %v77_v21 = vmul.f32 %v67_v15, %v61_v7 }
  0x31   :  { %v80_v22 = vmul.f32 %v78_v14, %v74_v18 }
  0x32   :  { %v81_v23 = vmul.f32 %v79_v17, %v75_v20 }
  0x33   :  { %v82_v24 = vadd.f32 %v80_v22, %v76_v19 }
  0x34   :  { %v83_v25 = vadd.f32 %v81_v23, %v77_v21 }
  0x35   :  { %v84_v26 = vsub.f32 0.0, %v82_v24 }
  0x36   :  { %v85_v27 = vsub.f32 0.0, %v83_v25 }
  0x37   :  { %v86_v28 = vsub.f32 0.0, %v84_v26 }
  0x38   :  { %v87_v29 = vsub.f32 0.0, %v85_v27 }
  0x39   :  { %v88_v30 = vmul.f32 1.442695, %v86_v28 }
  0x3a   :  { %v90_v31 = vmul.f32 1.442695, %v87_v29 }
  0x3b   :  { %154 = vpow2.f32 %v88_v30 }
  0x3c   :  { %156 = vpow2.f32 %v90_v31 }
  0x48   :  { %v155_v32 = vpop.eup %154 }
  0x49   :  { %v157_v33 = vpop.eup %156  ;;  %v92_v34 = vsub.f32 1.0, %v155_v32 }
  0x4a   :  { %v93_v35 = vsub.f32 1.0, %v157_v33 }
  0x4b   :  { %v94_v36 = vmul.f32 %v92_v34, %v92_v34 }
  0x4c   :  { %v95_v37 = vmul.f32 %v93_v35, %v93_v35 }
  0x4d   :  { %v96_v38 = vmul.f32 %v94_v36, %v84_v26 }
  0x4e   :  { %v97_v39 = vmul.f32 %v95_v37, %v85_v27 }
  0x50   :  { %v109_v40 = vadd.f32 %v97_v39, %v96_v38 }
  0x52   :  { %110 = vadd.xlane.f32.xlu0 %v109_v40 }
  0xdb   :  { %v111_v41 = vpop.xlane.xlu0 %110 }
  0xdc   :  { %v112_v42 = vrot.slane %v111_v41, 4 }
  0xde   :  { %v113_v43 = vadd.f32 %v112_v42, %v111_v41 }
  0xe0   :  { %v114_v44 = vrot.slane %v113_v43, 2 }
  0xe2   :  { %v115_v45 = vadd.f32 %v114_v44, %v113_v43 }
  0xe4   :  { %v116_v46 = vrot.slane %v115_v45, 1 }
  0xe6   :  { %v117_v47 = vadd.f32 %v116_v46, %v115_v45 }
  0xe8   :  { %139 = vpush %v117_v47 }
 0x119   :  { %s140_s21 = spop %139 }
 0x11a   :  { %s119_s22 = smul.f32 0.00048828125, %s140_s21 }
 0x11c   :  { %v120_v48 = vstv %s119_s22 }
 0x11d   :  { %122 = vst.msk [vmem:[#allocation8] sm:$0x1] %vm121_vm0, %v120_v48 }
 0x11e   :  { %209 = shalt.err (!%p206_p0)
}
 0x11f   :  { %132 = dma.vmem_to_hbm [thread:$0]  %s130_s1, 16, %s255_s2, [#allocation5]  }
 0x120   :  { %222 = dma.done.wait [#allocation5], 16  }
 0x121   :  { %223 = vsyncadd [#allocation5], 4294967280 }
 0x122   :  { %136 = vsyncpa [#allocation4], 1 }
 0x123   :  { %137 = vsyncpa [#allocation7], 1 }
 0x124   :  { %138 = vsyncpa [#allocation5], 1 }

</bundles_post_ra>
